<compile_context>
chip_gen: v6e
topology: v6e:2x2x1
jax: 0.10.0
libtpu: 0.0.40
codegen_flags: <defaults>
</compile_context>

<pallas_src>
import jax
import jax.numpy as jnp
from jax.experimental import pallas as pl
from jax.experimental.pallas import tpu as pltpu

EMB_LENGTH = 11        # E: true hidden / embedding size (matches the PyTorch model)
PADDED_E = 128         # EP: lane-padded size used inside the kernel


def _encoder_gru_kernel(tok_ref,     # (T,) int32 SMEM scalar-prefetch (drives emb index_map)
                        x_ref,       # (1, 1, EP) f32 — embedding row for this step
                        h0_ref,      # (1, EP)    f32 — initial hidden
                        w_ih_ref,    # (EP, 3EP)  f32 — [W_ir.T | W_iz.T | W_in.T], zero-padded
                        w_hh_ref,    # (EP, 3EP)  f32 — [W_hr.T | W_hz.T | W_hn.T], zero-padded
                        b_ih_ref,    # (1, 3EP)   f32
                        b_hh_ref,    # (1, 3EP)   f32
                        out_ref,     # (1, 1, EP) f32 — hidden after this step
                        h_scratch):  # VMEM (1, EP) f32 — carried hidden state
    EP = PADDED_E
    t = pl.program_id(0)

    @pl.when(t == 0)
    def _():
        h_scratch[...] = h0_ref[...]

    x = x_ref[0]            # (1, EP)
    h = h_scratch[...]      # (1, EP)

    # All three gates in two MXU passes; weights already transposed on host,
    # so no in-kernel .T.  Gate slices below are 128-lane aligned (free).
    gi = jnp.dot(x, w_ih_ref[...], preferred_element_type=jnp.float32) + b_ih_ref[...]
    gh = jnp.dot(h, w_hh_ref[...], preferred_element_type=jnp.float32) + b_hh_ref[...]

    r = jax.nn.sigmoid(gi[:, 0:EP] + gh[:, 0:EP])
    z = jax.nn.sigmoid(gi[:, EP:2 * EP] + gh[:, EP:2 * EP])
    n = jnp.tanh(gi[:, 2 * EP:3 * EP] + r * gh[:, 2 * EP:3 * EP])
    h_new = (1.0 - z) * n + z * h          # padded lanes: 0.5*tanh(0)+0.5*0 == 0

    h_scratch[...] = h_new                 # carry to next grid step
    out_ref[0] = h_new                     # per-step output (== new hidden)


def pack_params(params):
    """One-time relayout of PyTorch-layout params into the kernel layout."""
    E, EP = EMB_LENGTH, PADDED_E
    emb = params["embedding"].astype(jnp.float32)   # (vocab, E)
    w_ih = params["w_ih"].astype(jnp.float32)       # (3E, E)  rows: [r; z; n]
    w_hh = params["w_hh"].astype(jnp.float32)       # (3E, E)
    b_ih = params["b_ih"].astype(jnp.float32)       # (3E,)
    b_hh = params["b_hh"].astype(jnp.float32)       # (3E,)
    vocab = emb.shape[0]

    def pad_gate_w(w):      # (3E, E) -> (EP, 3EP), pre-transposed per gate
        cols = []
        for g in range(3):
            wg_t = w[g * E:(g + 1) * E, :].T        # (E, E): x @ wg_t == x @ W_g.T
            cols.append(jnp.zeros((EP, EP), jnp.float32).at[:E, :E].set(wg_t))
        return jnp.concatenate(cols, axis=1)        # (EP, 3EP)

    def pad_gate_b(b):      # (3E,) -> (1, 3EP)
        cols = [jnp.zeros((EP,), jnp.float32).at[:E].set(b[g * E:(g + 1) * E])
                for g in range(3)]
        return jnp.concatenate(cols)[None, :]

    emb_p = jnp.zeros((vocab, 1, EP), jnp.float32).at[:, 0, :E].set(emb)

    return {
        "vocab": vocab,
        "emb": emb_p,                  # (vocab, 1, EP)
        "w_ih_t": pad_gate_w(w_ih),    # (EP, 3EP)
        "w_hh_t": pad_gate_w(w_hh),    # (EP, 3EP)
        "b_ih": pad_gate_b(b_ih),      # (1, 3EP)
        "b_hh": pad_gate_b(b_hh),      # (1, 3EP)
    }


def encoder_rnn_sequence(tokens, hidden0, packed):
    """Run the encoder over a whole token sequence in ONE pallas_call.

    tokens: (T,) int32; hidden0: (1, 1, E) f32.
    Returns (outputs (T, 1, E), final_hidden (1, 1, E)).
    """
    E, EP = EMB_LENGTH, PADDED_E
    tokens = jnp.asarray(tokens, jnp.int32).reshape(-1)
    T = int(tokens.shape[0])

    h0 = jnp.zeros((1, EP), jnp.float32).at[:, :E].set(
        hidden0.reshape(1, E).astype(jnp.float32))

    const = lambda shape: pl.BlockSpec(shape, lambda t, toks: (0,) * len(shape))

    outs_p = pl.pallas_call(
        _encoder_gru_kernel,
        out_shape=jax.ShapeDtypeStruct((T, 1, EP), jnp.float32),
        grid_spec=pltpu.PrefetchScalarGridSpec(
            num_scalar_prefetch=1,
            grid=(T,),
            in_specs=[
                # one embedding row per step, gathered via the prefetched token id
                pl.BlockSpec((1, 1, EP), lambda t, toks: (toks[t], 0, 0)),
                const((1, EP)),         # initial hidden
                const((EP, 3 * EP)),    # W_ih (VMEM-resident across all steps)
                const((EP, 3 * EP)),    # W_hh
                const((1, 3 * EP)),     # b_ih
                const((1, 3 * EP)),     # b_hh
            ],
            out_specs=pl.BlockSpec((1, 1, EP), lambda t, toks: (t, 0, 0)),
            scratch_shapes=[pltpu.VMEM((1, EP), jnp.float32)],
        ),
        compiler_params=pltpu.CompilerParams(
            dimension_semantics=("arbitrary",)),    # recurrence: strictly sequential
    )(tokens, packed["emb"], h0, packed["w_ih_t"], packed["w_hh_t"],
      packed["b_ih"], packed["b_hh"])

    outs = outs_p[:, :, :E]             # (T, 1, E)  strip lane padding
    hidden_new = outs[T - 1][None]      # (1, 1, E)
    return outs, hidden_new


def encoder_rnn_forward(token_idx, hidden, packed):
    """Single-step forward matching EncoderRNN.forward: (output, hidden), both (1,1,E)."""
    tok = jnp.asarray(token_idx, jnp.int32).reshape(-1)[:1]
    outs, hidden_new = encoder_rnn_sequence(tok, hidden, packed)
    return outs[0][None], hidden_new


def init_params(key, input_size):
    """Deterministic parameter init mirroring nn.Embedding / nn.GRU shapes."""
    E = EMB_LENGTH
    k0, k1, k2, k3, k4 = jax.random.split(key, 5)
    bound = 1.0 / jnp.sqrt(E)
    return {
        "embedding": jax.random.normal(k0, (input_size, E), jnp.float32),
        "w_ih": jax.random.uniform(k1, (3 * E, E), jnp.float32, -bound, bound),
        "w_hh": jax.random.uniform(k2, (3 * E, E), jnp.float32, -bound, bound),
        "b_ih": jax.random.uniform(k3, (3 * E,), jnp.float32, -bound, bound),
        "b_hh": jax.random.uniform(k4, (3 * E,), jnp.float32, -bound, bound),
    }


def gru_reference(tokens, hidden0, params):
    """Pure-JAX reference (PyTorch GRU semantics) for numerical checking."""
    E = EMB_LENGTH
    emb, w_ih, w_hh = params["embedding"], params["w_ih"], params["w_hh"]
    b_ih, b_hh = params["b_ih"], params["b_hh"]

    def step(h, tok):
        x = emb[tok][None, :]
        gi = x @ w_ih.T + b_ih
        gh = h @ w_hh.T + b_hh
        r = jax.nn.sigmoid(gi[:, :E] + gh[:, :E])
        z = jax.nn.sigmoid(gi[:, E:2 * E] + gh[:, E:2 * E])
        n = jnp.tanh(gi[:, 2 * E:] + r * gh[:, 2 * E:])
        h_new = (1.0 - z) * n + z * h
        return h_new, h_new

    h_final, outs = jax.lax.scan(step, hidden0.reshape(1, E), tokens)
    return outs, h_final


if __name__ == "__main__":
    input_size = 16                       # small vocab
    key = jax.random.PRNGKey(0)
    params = init_params(key, input_size)
    packed = pack_params(params)          # one-time host-side relayout

    # --- single-step forward: exact EncoderRNN.forward semantics ---
    token = jnp.array(3, jnp.int32)
    hidden0 = jnp.zeros((1, 1, EMB_LENGTH), jnp.float32)      # initHidden()
    output, hidden1 = encoder_rnn_forward(token, hidden0, packed)
    jax.block_until_ready((output, hidden1))
    assert output.shape == (1, 1, EMB_LENGTH)
    assert hidden1.shape == (1, 1, EMB_LENGTH)

    # --- fused sequence encode: one pallas_call for all timesteps ---
    tokens = jnp.array([3, 1, 4, 1, 5, 9, 2, 6], jnp.int32)
    outs, h_final = encoder_rnn_sequence(tokens, hidden0, packed)
    jax.block_until_ready((outs, h_final))

    # numerical check against the pure-JAX GRU reference
    outs_ref, h_ref = gru_reference(tokens, hidden0, params)
    assert jnp.allclose(outs, outs_ref, atol=1e-4, rtol=1e-4), "sequence mismatch"
    assert jnp.allclose(h_final.reshape(1, EMB_LENGTH), h_ref, atol=1e-4, rtol=1e-4)
    out1_ref, h1_ref = gru_reference(tokens[:1], hidden0, params)
    assert jnp.allclose(output.reshape(1, EMB_LENGTH), h1_ref, atol=1e-4, rtol=1e-4)

    print("KERNEL_OK")
</pallas_src>

<mosaic_0001>
module attributes {stable_mosaic.version = 11 : i64} {
  func.func @_encoder_gru_kernel(%arg0: i32, %arg1: memref<1xi32, #tpu.memory_space<smem>>, %arg2: memref<1x1x128xf32, #tpu.memory_space<vmem>>, %arg3: memref<1x128xf32, #tpu.memory_space<vmem>>, %arg4: memref<128x384xf32, #tpu.memory_space<vmem>>, %arg5: memref<128x384xf32, #tpu.memory_space<vmem>>, %arg6: memref<1x384xf32, #tpu.memory_space<vmem>>, %arg7: memref<1x384xf32, #tpu.memory_space<vmem>>, %arg8: memref<1x1x128xf32, #tpu.memory_space<vmem>>, %arg9: memref<1x128xf32, #tpu.memory_space<vmem>>) attributes {dimension_semantics = [#tpu.dimension_semantics<arbitrary>], iteration_bounds = array<i64: 1>, scalar_prefetch = 1 : i64, scratch_operands = 1 : i64, tpu.core_type = #tpu.core_type<tc>, window_params = [{transform_indices = @transform_0, window_bounds = array<i64: 1, 1, 128>}, {pipeline_mode = #tpu.pipeline_mode<synchronous>, transform_indices = @transform_1, window_bounds = array<i64: 1, 128>}, {pipeline_mode = #tpu.pipeline_mode<synchronous>, transform_indices = @transform_2, window_bounds = array<i64: 128, 384>}, {pipeline_mode = #tpu.pipeline_mode<synchronous>, transform_indices = @transform_3, window_bounds = array<i64: 128, 384>}, {pipeline_mode = #tpu.pipeline_mode<synchronous>, transform_indices = @transform_4, window_bounds = array<i64: 1, 384>}, {pipeline_mode = #tpu.pipeline_mode<synchronous>, transform_indices = @transform_5, window_bounds = array<i64: 1, 384>}, {transform_indices = @transform_6, window_bounds = array<i64: 1, 1, 128>}]} {
    %c0_i32 = arith.constant 0 : i32
    %0 = arith.cmpi eq, %arg0, %c0_i32 : i32
    %1 = arith.extui %0 : i1 to i32
    %c0_i32_0 = arith.constant 0 : i32
    %2 = arith.cmpi ne, %1, %c0_i32_0 : i32
    scf.if %2 {
      %c0_22 = arith.constant 0 : index
      %c0_23 = arith.constant 0 : index
      %44 = vector.load %arg3[%c0_22, %c0_23] : memref<1x128xf32, #tpu.memory_space<vmem>>, vector<1x128xf32>
      %c0_24 = arith.constant 0 : index
      %c0_25 = arith.constant 0 : index
      %45 = vector.load %arg9[%c0_24, %c0_25] : memref<1x128xf32, #tpu.memory_space<vmem>>, vector<1x128xf32>
      tpu.vector_store %arg9[%c0_24, %c0_25], %44 {strides = array<i32>} : memref<1x128xf32, #tpu.memory_space<vmem>>, vector<1x128xf32>,
    } else {
    }
    %c0 = arith.constant 0 : index
    %c0_1 = arith.constant 0 : index
    %c0_2 = arith.constant 0 : index
    %3 = vector.load %arg2[%c0, %c0_1, %c0_2] : memref<1x1x128xf32, #tpu.memory_space<vmem>>, vector<1x1x128xf32>
    %4 = vector.shape_cast %3 : vector<1x1x128xf32> to vector<1x128xf32>
    %c0_3 = arith.constant 0 : index
    %c0_4 = arith.constant 0 : index
    %5 = vector.load %arg9[%c0_3, %c0_4] : memref<1x128xf32, #tpu.memory_space<vmem>>, vector<1x128xf32>
    %c0_5 = arith.constant 0 : index
    %c0_6 = arith.constant 0 : index
    %6 = vector.load %arg4[%c0_5, %c0_6] : memref<128x384xf32, #tpu.memory_space<vmem>>, vector<128x384xf32>
    %cst = arith.constant dense<0.000000e+00> : vector<1x384xf32>
    %7 = tpu.matmul %4, %6, %cst {dimension_numbers = #tpu.dot_dimension_numbers<[1], [0], [0], [1], [0, 0, 1, 1], [], []>} : vector<1x128xf32>, vector<128x384xf32>, vector<1x384xf32> -> vector<1x384xf32>
    %c0_7 = arith.constant 0 : index
    %c0_8 = arith.constant 0 : index
    %8 = vector.load %arg6[%c0_7, %c0_8] : memref<1x384xf32, #tpu.memory_space<vmem>>, vector<1x384xf32>
    %9 = arith.addf %7, %8 : vector<1x384xf32>
    %c0_9 = arith.constant 0 : index
    %c0_10 = arith.constant 0 : index
    %10 = vector.load %arg5[%c0_9, %c0_10] : memref<128x384xf32, #tpu.memory_space<vmem>>, vector<128x384xf32>
    %cst_11 = arith.constant dense<0.000000e+00> : vector<1x384xf32>
    %11 = tpu.matmul %5, %10, %cst_11 {dimension_numbers = #tpu.dot_dimension_numbers<[1], [0], [0], [1], [0, 0, 1, 1], [], []>} : vector<1x128xf32>, vector<128x384xf32>, vector<1x384xf32> -> vector<1x384xf32>
    %c0_12 = arith.constant 0 : index
    %c0_13 = arith.constant 0 : index
    %12 = vector.load %arg7[%c0_12, %c0_13] : memref<1x384xf32, #tpu.memory_space<vmem>>, vector<1x384xf32>
    %13 = arith.addf %11, %12 : vector<1x384xf32>
    %14 = vector.extract_strided_slice %9 {offsets = [0, 0], sizes = [1, 128], strides = [1, 1]} : vector<1x384xf32> to vector<1x128xf32>
    %15 = vector.extract_strided_slice %13 {offsets = [0, 0], sizes = [1, 128], strides = [1, 1]} : vector<1x384xf32> to vector<1x128xf32>
    %16 = arith.addf %14, %15 : vector<1x128xf32>
    %17 = arith.negf %16 : vector<1x128xf32>
    %18 = math.exp %17 : vector<1x128xf32>
    %cst_14 = arith.constant 1.000000e+00 : f32
    %19 = vector.broadcast %cst_14 : f32 to vector<1x128xf32>
    %20 = arith.addf %19, %18 : vector<1x128xf32>
    %21 = arith.divf %19, %20 : vector<1x128xf32>
    %22 = vector.extract_strided_slice %9 {offsets = [0, 128], sizes = [1, 128], strides = [1, 1]} : vector<1x384xf32> to vector<1x128xf32>
    %23 = vector.extract_strided_slice %13 {offsets = [0, 128], sizes = [1, 128], strides = [1, 1]} : vector<1x384xf32> to vector<1x128xf32>
    %24 = arith.addf %22, %23 : vector<1x128xf32>
    %25 = arith.negf %24 : vector<1x128xf32>
    %26 = math.exp %25 : vector<1x128xf32>
    %cst_15 = arith.constant 1.000000e+00 : f32
    %27 = vector.broadcast %cst_15 : f32 to vector<1x128xf32>
    %28 = arith.addf %27, %26 : vector<1x128xf32>
    %29 = arith.divf %27, %28 : vector<1x128xf32>
    %30 = vector.extract_strided_slice %9 {offsets = [0, 256], sizes = [1, 128], strides = [1, 1]} : vector<1x384xf32> to vector<1x128xf32>
    %31 = vector.extract_strided_slice %13 {offsets = [0, 256], sizes = [1, 128], strides = [1, 1]} : vector<1x384xf32> to vector<1x128xf32>
    %32 = arith.mulf %21, %31 : vector<1x128xf32>
    %33 = arith.addf %30, %32 : vector<1x128xf32>
    %34 = math.tanh %33 : vector<1x128xf32>
    %cst_16 = arith.constant 1.000000e+00 : f32
    %35 = vector.broadcast %cst_16 : f32 to vector<1x128xf32>
    %36 = arith.subf %35, %29 : vector<1x128xf32>
    %37 = arith.mulf %36, %34 : vector<1x128xf32>
    %38 = arith.mulf %29, %5 : vector<1x128xf32>
    %39 = arith.addf %37, %38 : vector<1x128xf32>
    %c0_17 = arith.constant 0 : index
    %c0_18 = arith.constant 0 : index
    %40 = vector.load %arg9[%c0_17, %c0_18] : memref<1x128xf32, #tpu.memory_space<vmem>>, vector<1x128xf32>
    tpu.vector_store %arg9[%c0_17, %c0_18], %39 {strides = array<i32>} : memref<1x128xf32, #tpu.memory_space<vmem>>, vector<1x128xf32>,
    %c0_19 = arith.constant 0 : index
    %c0_20 = arith.constant 0 : index
    %c0_21 = arith.constant 0 : index
    %41 = vector.load %arg8[%c0_19, %c0_20, %c0_21] : memref<1x1x128xf32, #tpu.memory_space<vmem>>, vector<1x1x128xf32>
    %42 = vector.shape_cast %41 : vector<1x1x128xf32> to vector<1x128xf32>
    %43 = vector.shape_cast %39 : vector<1x128xf32> to vector<1x1x128xf32>
    tpu.vector_store %arg8[%c0_19, %c0_20, %c0_21], %43 {strides = array<i32>} : memref<1x1x128xf32, #tpu.memory_space<vmem>>, vector<1x1x128xf32>,
    return
  }
  func.func @transform_0(%arg0: i32, %arg1: memref<1xi32, #tpu.memory_space<smem>>) -> (i32, i32, i32) {
    %0 = arith.index_cast %arg0 : i32 to index
    %1 = memref.load %arg1[%0] : memref<1xi32, #tpu.memory_space<smem>>
    %c0_i32 = arith.constant 0 : i32
    %c0_i32_0 = arith.constant 0 : i32
    %c0_i32_1 = arith.constant 0 : i32
    return %1, %c0_i32, %c0_i32_0 : i32, i32, i32
  }
  func.func @transform_1(%arg0: i32, %arg1: memref<1xi32, #tpu.memory_space<smem>>) -> (i32, i32) {
    %c0_i32 = arith.constant 0 : i32
    %c0_i32_0 = arith.constant 0 : i32
    %c0_i32_1 = arith.constant 0 : i32
    return %c0_i32, %c0_i32_0 : i32, i32
  }
  func.func @transform_2(%arg0: i32, %arg1: memref<1xi32, #tpu.memory_space<smem>>) -> (i32, i32) {
    %c0_i32 = arith.constant 0 : i32
    %c0_i32_0 = arith.constant 0 : i32
    %c0_i32_1 = arith.constant 0 : i32
    return %c0_i32, %c0_i32_0 : i32, i32
  }
  func.func @transform_3(%arg0: i32, %arg1: memref<1xi32, #tpu.memory_space<smem>>) -> (i32, i32) {
    %c0_i32 = arith.constant 0 : i32
    %c0_i32_0 = arith.constant 0 : i32
    %c0_i32_1 = arith.constant 0 : i32
    return %c0_i32, %c0_i32_0 : i32, i32
  }
  func.func @transform_4(%arg0: i32, %arg1: memref<1xi32, #tpu.memory_space<smem>>) -> (i32, i32) {
    %c0_i32 = arith.constant 0 : i32
    %c0_i32_0 = arith.constant 0 : i32
    %c0_i32_1 = arith.constant 0 : i32
    return %c0_i32, %c0_i32_0 : i32, i32
  }
  func.func @transform_5(%arg0: i32, %arg1: memref<1xi32, #tpu.memory_space<smem>>) -> (i32, i32) {
    %c0_i32 = arith.constant 0 : i32
    %c0_i32_0 = arith.constant 0 : i32
    %c0_i32_1 = arith.constant 0 : i32
    return %c0_i32, %c0_i32_0 : i32, i32
  }
  func.func @transform_6(%arg0: i32, %arg1: memref<1xi32, #tpu.memory_space<smem>>) -> (i32, i32, i32) {
    %c0_i32 = arith.constant 0 : i32
    %c0_i32_0 = arith.constant 0 : i32
    %c0_i32_1 = arith.constant 0 : i32
    return %arg0, %c0_i32, %c0_i32_0 : i32, i32, i32
  }
}

</mosaic_0001>

<bundles_post_ra>
// kernel: tpu_custom_call.1
= control target key start
LH: loop header
LB: loop body
LE: loop exit
PB: predicated region body
PF: predicated region fallthrough
CT: control target
= control target key end

     0   :  { %13 = vsyncpa [#allocation6], 0  ;;  %s870_s0 = inlined_call_operand.<no memory space> [shape: s32[1], index: 0, kind: input, shape index: {}]   ;;  %s871_s1 = inlined_call_operand.hbm [shape: f32[16,1,128], index: 1, kind: input, shape index: {}]   ;;  %s872_s2 = inlined_call_operand.vmem [shape: f32[1,128], index: 2, kind: input, shape index: {}]   ;;  %s873_s3 = inlined_call_operand.hbm [shape: f32[128,384], index: 3, kind: input, shape index: {}]   ;;  %s874_s4 = inlined_call_operand.hbm [shape: f32[128,384], index: 4, kind: input, shape index: {}]   ;;  %s875_s5 = inlined_call_operand.vmem [shape: f32[1,384], index: 5, kind: input, shape index: {}]   ;;  %s876_s6 = inlined_call_operand.vmem [shape: f32[1,384], index: 6, kind: input, shape index: {}]   ;;  %s877_s7 = inlined_call_operand.hbm [shape: f32[1,1,128], index: 7, kind: output, shape index: {}]  }
   0x1   :  { %14 = vsyncpa [#allocation9], 0 }
   0x2   :  { %15 = vsyncpa [#allocation7], 0  ;;  %s743_s24 = smov [#allocation8]   ;;  %s530_s28 = sshll.u32 %s870_s0, 4 }
   0x3   :  { %s36_s25 = sshll.u32 %s743_s24, 4  ;;  %s37_s25 = int_to_ptr.vmem [resolvable:$true] %s36_s25 }
   0x4   :  { %s663_s29 = scalar_lea.vmem %s37_s25, 6144  ;;  %p668_p1 = scmp.lt.s32.totalorder %s37_s25, %s37_s25 }
   0x5   :  { %p664_p0 = scmp.ne.s32.totalorder %s37_s25, %s663_s29  ;;  %p669_p2 = scmp.lt.s32.totalorder %s663_s29, %s663_s29 }
   0x7   :  { %p670_p3 = por %p669_p2, %p668_p1 }
   0x9   :  { %p671_p4 = pnand %p670_p3, %p664_p0 }
   0xb   :  { %674 = shalt.err (!%p671_p4)
}
   0xc   :  { %s744_s30 = smov 384   ;;  %s745_s8 = smov 24  }
   0xd   :  { %42 = dma.hbm_to_vmem [thread:$0]  %s873_s3, 6144, %s37_s25, [#allocation9], %s744_s30, %s744_s30, %s745_s8  }
   0xe   :  { %s23_s0 = scalar_lea.hbm %s871_s1, %s530_s28  ;;  %s746_s13 = smov [#allocation5]  }
   0xf   :  { %s25_s14 = sshll.u32 %s746_s13, 4  ;;  %s747_s15 = smov [#allocation10]   ;;  %s26_s14 = int_to_ptr.vmem [resolvable:$true] %s25_s14 }
  0x10   :  { %s48_s16 = sshll.u32 %s747_s15, 4  ;;  %s675_s17 = scalar_lea.hbm %s23_s0, 16  ;;  %s49_s16 = int_to_ptr.vmem [resolvable:$true] %s48_s16 }
  0x11   :  { %p676_p5 = scmp.ne.s32.totalorder %s23_s0, %s675_s17  ;;  %s677_s20 = scalar_lea.hbm %s871_s1, 256 }
  0x12   :  { %p678_p6 = scmp.lt.s32.totalorder %s23_s0, %s871_s1  ;;  %p679_p7 = scmp.lt.s32.totalorder %s677_s20, %s675_s17 }
  0x14   :  { %p680_p8 = por %p679_p7, %p678_p6 }
  0x16   :  { %p681_p9 = pnand %p680_p8, %p676_p5 }
  0x18   :  { %684 = shalt.err (!%p681_p9)
}
  0x19   :  { %s685_s3 = scalar_lea.vmem %s26_s14, 16  ;;  %s689_s23 = scalar_lea.vmem %s26_s14, 32 }
  0x1a   :  { %p686_p10 = scmp.ne.s32.totalorder %s26_s14, %s685_s3  ;;  %p690_p11 = scmp.lt.s32.totalorder %s26_s14, %s26_s14 }
  0x1b   :  { %p691_p12 = scmp.lt.s32.totalorder %s689_s23, %s685_s3 }
  0x1d   :  { %p692_p13 = por %p691_p12, %p690_p11 }
  0x1f   :  { %p693_p0 = pnand %p692_p13, %p686_p10 }
  0x21   :  { %696 = shalt.err (!%p693_p0)
}
  0x22   :  { %28 = dma.hbm_to_vmem [thread:$0]  %s23_s0, 16, %s26_s14, [#allocation6]  }
  0x23   :  { %s705_s24 = scalar_lea.vmem %s49_s16, 6144  ;;  %p710_p2 = scmp.lt.s32.totalorder %s49_s16, %s49_s16 }
  0x24   :  { %p706_p1 = scmp.ne.s32.totalorder %s49_s16, %s705_s24  ;;  %p711_p3 = scmp.lt.s32.totalorder %s705_s24, %s705_s24 }
  0x26   :  { %p712_p4 = por %p711_p3, %p710_p2 }
  0x28   :  { %p713_p6 = pnand %p712_p4, %p706_p1 }
  0x2a   :  { %716 = shalt.err (!%p713_p6)
}
  0x2b   :  { %54 = dma.hbm_to_vmem [thread:$0]  %s874_s4, 6144, %s49_s16, [#allocation9], %s744_s30, %s744_s30, %s745_s8  }
  0x2c   :  { %737 = dma.done.wait [#allocation6], 16  }
  0x2d   :  { %738 = vsyncadd [#allocation6], 4294967280 }
  0x2e   :  { %739 = dma.done.wait [#allocation9], 12288  }
  0x2f   :  { %740 = vsyncadd [#allocation9], 4294955008  ;;  %v748_v0 = vmov 0.0   ;;  %vm749_vm0 = vmmov 0   ;;  %v123_v1 = vld [vmem:[#allocation8 + $0x170] sm:$0xff]  ;;  %v122_v2 = vld [vmem:[#allocation8 + $0x168] sm:$0xff] }
  0x30   :  { %206 = vmatprep.mubr.f32.mxu0 %v748_v0  ;;  %567 = vmatprep.subr.mxu1 %v748_v0  ;;  %v120_v3 = vld [vmem:[#allocation8 + $0x158] sm:$0xff]  ;;  %v119_v4 = vld [vmem:[#allocation8 + $0x150] sm:$0xff]  ;;  %v117_v5 = vld [vmem:[#allocation8 + $0x140] sm:$0xff] }
  0x31   :  { %599 = vmatprep.mubr.msk.f32.mxu1 %vm749_vm0, %v748_v0  ;;  %142 = vmatprep.subr.mxu0 %v123_v1  ;;  %v116_v6 = vld [vmem:[#allocation8 + $0x138] sm:$0xff]  ;;  %v114_v7 = vld [vmem:[#allocation8 + $0x128] sm:$0xff]  ;;  %v113_v8 = vld [vmem:[#allocation8 + $0x120] sm:$0xff] }
  0x32   :  { %143 = vmatpush1.msra.mxu0 %v122_v2  ;;  %v111_v9 = vld [vmem:[#allocation8 + $0x110] sm:$0xff]  ;;  %v110_v10 = vld [vmem:[#allocation8 + $0x108] sm:$0xff]  ;;  %v108_v11 = vld [vmem:[#allocation8 + $0xf8] sm:$0xff] }
  0x33   :  { %144 = vmatprep.subr.mxu0 %v120_v3  ;;  %v107_v12 = vld [vmem:[#allocation8 + $0xf0] sm:$0xff]  ;;  %v105_v13 = vld [vmem:[#allocation8 + $0xe0] sm:$0xff]  ;;  %v104_v14 = vld [vmem:[#allocation8 + $0xd8] sm:$0xff] }
  0x34   :  { %145 = vmatpush1.msra.mxu0 %v119_v4  ;;  %v124_v15 = vld [vmem:[#allocation8 + $0x178] sm:$0xff]  ;;  %v102_v16 = vld [vmem:[#allocation8 + $0xc8] sm:$0xff]  ;;  %v121_v17 = vld [vmem:[#allocation8 + $0x160] sm:$0xff] }
  0x35   :  { %146 = vmatprep.subr.mxu0 %v117_v5  ;;  %568 = vmatpush3.msra.mxu1 %v124_v15  ;;  %v101_v18 = vld [vmem:[#allocation8 + $0xc0] sm:$0xff]  ;;  %v118_v19 = vld [vmem:[#allocation8 + $0x148] sm:$0xff]  ;;  %v99_v20 = vld [vmem:[#allocation8 + $0xb0] sm:$0xff] }
  0x36   :  { %147 = vmatpush1.msra.mxu0 %v116_v6  ;;  %569 = vmatprep.subr.mxu1 %v748_v0  ;;  %v98_v21 = vld [vmem:[#allocation8 + $0xa8] sm:$0xff]  ;;  %v115_v22 = vld [vmem:[#allocation8 + $0x130] sm:$0xff]  ;;  %v96_v23 = vld [vmem:[#allocation8 + $0x98] sm:$0xff] }
  0x37   :  { %148 = vmatprep.subr.mxu0 %v114_v7  ;;  %570 = vmatpush3.msra.mxu1 %v121_v17  ;;  %v95_v24 = vld [vmem:[#allocation8 + $0x90] sm:$0xff]  ;;  %v112_v25 = vld [vmem:[#allocation8 + $0x118] sm:$0xff]  ;;  %v93_v26 = vld [vmem:[#allocation8 + $0x80] sm:$0xff] }
  0x38   :  { %149 = vmatpush1.msra.mxu0 %v113_v8  ;;  %571 = vmatprep.subr.mxu1 %v748_v0  ;;  %v92_v27 = vld [vmem:[#allocation8 + $0x78] sm:$0xff]  ;;  %v109_v28 = vld [vmem:[#allocation8 + $0x100] sm:$0xff]  ;;  %v90_v29 = vld [vmem:[#allocation8 + $0x68] sm:$0xff] }
  0x39   :  { %150 = vmatprep.subr.mxu0 %v111_v9  ;;  %572 = vmatpush3.msra.mxu1 %v118_v19  ;;  %v89_v30 = vld [vmem:[#allocation8 + $0x60] sm:$0xff]  ;;  %v106_v31 = vld [vmem:[#allocation8 + $0xe8] sm:$0xff]  ;;  %v87_v32 = vld [vmem:[#allocation8 + $0x50] sm:$0xff] }
  0x3a   :  { %151 = vmatpush1.msra.mxu0 %v110_v10  ;;  %573 = vmatprep.subr.mxu1 %v748_v0  ;;  %v86_v33 = vld [vmem:[#allocation8 + $0x48] sm:$0xff]  ;;  %v103_v34 = vld [vmem:[#allocation8 + $0xd0] sm:$0xff]  ;;  %v84_v35 = vld [vmem:[#allocation8 + $0x38] sm:$0xff] }
  0x3b   :  { %152 = vmatprep.subr.mxu0 %v108_v11  ;;  %574 = vmatpush3.msra.mxu1 %v115_v22  ;;  %v83_v36 = vld [vmem:[#allocation8 + $0x30] sm:$0xff]  ;;  %v100_v37 = vld [vmem:[#allocation8 + $0xb8] sm:$0xff]  ;;  %v81_v38 = vld [vmem:[#allocation8 + $0x20] sm:$0xff] }
  0x3c   :  { %153 = vmatpush1.msra.mxu0 %v107_v12  ;;  %575 = vmatprep.subr.mxu1 %v748_v0  ;;  %v80_v39 = vld [vmem:[#allocation8 + $0x18] sm:$0xff]  ;;  %v97_v40 = vld [vmem:[#allocation8 + $0xa0] sm:$0xff]  ;;  %v78_v42 = vld [vmem:[#allocation8 + $0x8] sm:$0xff] }
  0x3d   :  { %154 = vmatprep.subr.mxu0 %v105_v13  ;;  %576 = vmatpush3.msra.mxu1 %v112_v25  ;;  %v73_v41 = vld [vmem:[%s872_s2] sm:$0x1]  ;;  %v77_v43 = vld [vmem:[#allocation8] sm:$0xff]  ;;  %v94_v44 = vld [vmem:[#allocation8 + $0x88] sm:$0xff] }
  0x3e   :  { %155 = vmatpush1.msra.mxu0 %v104_v14  ;;  %577 = vmatprep.subr.mxu1 %v748_v0  ;;  %74 = vst [vmem:[#allocation2] sm:$0x1] %v73_v41  ;;  %v75_v45 = vld [vmem:[#allocation5] sm:$0x1]  ;;  %v329_v46 = vld [vmem:[#allocation10 + $0x170] sm:$0xff]  ;;  %v328_v47 = vld [vmem:[#allocation10 + $0x168] sm:$0xff] }
  0x3f   :  { %156 = vmatprep.subr.mxu0 %v102_v16  ;;  %578 = vmatpush3.msra.mxu1 %v109_v28  ;;  %v326_v48 = vld [vmem:[#allocation10 + $0x158] sm:$0xff]  ;;  %v91_v49 = vld [vmem:[#allocation8 + $0x70] sm:$0xff]  ;;  %v323_v51 = vld [vmem:[#allocation10 + $0x140] sm:$0xff] }
  0x40   :  { %157 = vmatpush1.msra.mxu0 %v101_v18  ;;  %579 = vmatprep.subr.mxu1 %v748_v0  ;;  %v325_v50 = vld [vmem:[#allocation10 + $0x150] sm:$0xff]  ;;  %v88_v52 = vld [vmem:[#allocation8 + $0x58] sm:$0xff]  ;;  %v320_v54 = vld [vmem:[#allocation10 + $0x128] sm:$0xff] }
  0x41   :  { %158 = vmatprep.subr.mxu0 %v99_v20  ;;  %580 = vmatpush3.msra.mxu1 %v106_v31  ;;  %v322_v53 = vld [vmem:[#allocation10 + $0x138] sm:$0xff]  ;;  %v85_v55 = vld [vmem:[#allocation8 + $0x40] sm:$0xff]  ;;  %v317_v57 = vld [vmem:[#allocation10 + $0x110] sm:$0xff] }
  0x42   :  { %159 = vmatpush1.msra.mxu0 %v98_v21  ;;  %581 = vmatprep.subr.mxu1 %v748_v0  ;;  %v319_v56 = vld [vmem:[#allocation10 + $0x120] sm:$0xff]  ;;  %v82_v58 = vld [vmem:[#allocation8 + $0x28] sm:$0xff]  ;;  %v314_v60 = vld [vmem:[#allocation10 + $0xf8] sm:$0xff] }
  0x43   :  { %160 = vmatprep.subr.mxu0 %v96_v23  ;;  %582 = vmatpush3.msra.mxu1 %v103_v34  ;;  %v316_v59 = vld [vmem:[#allocation10 + $0x108] sm:$0xff]  ;;  %v79_v61 = vld [vmem:[#allocation8 + $0x10] sm:$0xff]  ;;  %v311_v63 = vld [vmem:[#allocation10 + $0xe0] sm:$0xff] }
  0x44   :  { %161 = vmatpush1.msra.mxu0 %v95_v24  ;;  %583 = vmatprep.subr.mxu1 %v748_v0  ;;  %v313_v62 = vld [vmem:[#allocation10 + $0xf0] sm:$0xff]  ;;  %v310_v1 = vld [vmem:[#allocation10 + $0xd8] sm:$0xff]  ;;  %v308_v2 = vld [vmem:[#allocation10 + $0xc8] sm:$0xff] }
  0x45   :  { %162 = vmatprep.subr.mxu0 %v93_v26  ;;  %584 = vmatpush3.msra.mxu1 %v100_v37  ;;  %v330_v3 = vld [vmem:[#allocation10 + $0x178] sm:$0xff]  ;;  %v307_v4 = vld [vmem:[#allocation10 + $0xc0] sm:$0xff]  ;;  %v305_v5 = vld [vmem:[#allocation10 + $0xb0] sm:$0xff] }
  0x46   :  { %163 = vmatpush1.msra.mxu0 %v92_v27  ;;  %585 = vmatprep.subr.mxu1 %v748_v0  ;;  %v327_v6 = vld [vmem:[#allocation10 + $0x160] sm:$0xff]  ;;  %v304_v7 = vld [vmem:[#allocation10 + $0xa8] sm:$0xff]  ;;  %v302_v8 = vld [vmem:[#allocation10 + $0x98] sm:$0xff] }
  0x47   :  { %164 = vmatprep.subr.mxu0 %v90_v29  ;;  %586 = vmatpush3.msra.mxu1 %v97_v40  ;;  %v324_v9 = vld [vmem:[#allocation10 + $0x148] sm:$0xff]  ;;  %v301_v10 = vld [vmem:[#allocation10 + $0x90] sm:$0xff]  ;;  %v299_v11 = vld [vmem:[#allocation10 + $0x80] sm:$0xff] }
  0x48   :  { %165 = vmatpush1.msra.mxu0 %v89_v30  ;;  %587 = vmatprep.subr.mxu1 %v748_v0  ;;  %v321_v12 = vld [vmem:[#allocation10 + $0x130] sm:$0xff]  ;;  %v298_v13 = vld [vmem:[#allocation10 + $0x78] sm:$0xff]  ;;  %v296_v14 = vld [vmem:[#allocation10 + $0x68] sm:$0xff] }
  0x49   :  { %166 = vmatprep.subr.mxu0 %v87_v32  ;;  %588 = vmatpush3.msra.mxu1 %v94_v44  ;;  %v318_v15 = vld [vmem:[#allocation10 + $0x118] sm:$0xff]  ;;  %v295_v16 = vld [vmem:[#allocation10 + $0x60] sm:$0xff]  ;;  %v293_v17 = vld [vmem:[#allocation10 + $0x50] sm:$0xff] }
  0x4a   :  { %167 = vmatpush1.msra.mxu0 %v86_v33  ;;  %589 = vmatprep.subr.mxu1 %v748_v0  ;;  %v315_v18 = vld [vmem:[#allocation10 + $0x100] sm:$0xff]  ;;  %v292_v19 = vld [vmem:[#allocation10 + $0x48] sm:$0xff]  ;;  %v290_v20 = vld [vmem:[#allocation10 + $0x38] sm:$0xff] }
  0x4b   :  { %168 = vmatprep.subr.mxu0 %v84_v35  ;;  %590 = vmatpush3.msra.mxu1 %v91_v49  ;;  %v312_v21 = vld [vmem:[#allocation10 + $0xe8] sm:$0xff]  ;;  %v289_v22 = vld [vmem:[#allocation10 + $0x30] sm:$0xff]  ;;  %v287_v23 = vld [vmem:[#allocation10 + $0x20] sm:$0xff] }
  0x4c   :  { %169 = vmatpush1.msra.mxu0 %v83_v36  ;;  %591 = vmatprep.subr.mxu1 %v748_v0  ;;  %v309_v24 = vld [vmem:[#allocation10 + $0xd0] sm:$0xff]  ;;  %v286_v25 = vld [vmem:[#allocation10 + $0x18] sm:$0xff]  ;;  %v284_v26 = vld [vmem:[#allocation10 + $0x8] sm:$0xff] }
  0x4d   :  { %170 = vmatprep.subr.mxu0 %v81_v38  ;;  %592 = vmatpush3.msra.mxu1 %v88_v52  ;;  %v306_v27 = vld [vmem:[#allocation10 + $0xb8] sm:$0xff]  ;;  %v283_v28 = vld [vmem:[#allocation10] sm:$0xff]  ;;  %v300_v31 = vld [vmem:[#allocation10 + $0x88] sm:$0xff] }
  0x4e   :  { %171 = vmatpush1.msra.mxu0 %v80_v39  ;;  %593 = vmatprep.subr.mxu1 %v748_v0  ;;  %v846_v29 = vld [vmem:[#allocation2] sm:$0x1]  ;;  %v303_v30 = vld [vmem:[#allocation10 + $0xa0] sm:$0xff]  ;;  %v297_v32 = vld [vmem:[#allocation10 + $0x70] sm:$0xff]  ;;  %v127_v39 = vlaneseq }
  0x4f   :  { %172 = vmatprep.subr.mxu0 %v78_v42  ;;  %594 = vmatpush3.msra.mxu1 %v85_v55  ;;  %v294_v33 = vld [vmem:[#allocation10 + $0x58] sm:$0xff]  ;;  %v291_v34 = vld [vmem:[#allocation10 + $0x40] sm:$0xff]  ;;  %v288_v35 = vld [vmem:[#allocation10 + $0x28] sm:$0xff] }
  0x50   :  { %173 = vmatpush1.msra.mxu0 %v77_v43  ;;  %595 = vmatprep.subr.mxu1 %v748_v0  ;;  %v285_v36 = vld [vmem:[#allocation10 + $0x10] sm:$0xff]  ;;  %v128_v40 = vshrl.u32 %v127_v39, 7  ;;  %v125_v42 = vld [vmem:[%s875_s5] sm:$0x7]  ;;  %s750_s5 = smov [#allocation11]  }
  0x51   :  { %207 = vmatmul.mubr.f32.vlgmr.msra.gmra.mxu0 %v75_v45  ;;  %348 = vmatprep.subr.mxu0 %v329_v46  ;;  %v331_v44 = vld [vmem:[%s876_s6] sm:$0x7]  ;;  %s518_s6 = sshll.u32 %s750_s5, 4  ;;  %s519_s6 = int_to_ptr.vmem [resolvable:$true] %s518_s6 }
  0x52   :  { %349 = vmatpush1.msra.mxu0 %v328_v47  ;;  %596 = vmatpush3.msra.mxu1 %v82_v58  ;;  %v129_v41 = vsub.s32 0, %v128_v40  ;;  %v133_v47 = vsub.s32 1, %v128_v40  ;;  %s717_s30 = scalar_lea.vmem %s519_s6, 16  ;;  %s721_s8 = scalar_lea.vmem %s519_s6, 32 }
  0x53   :  { %350 = vmatprep.subr.mxu0 %v326_v48  ;;  %597 = vmatprep.subr.mxu1 %v748_v0  ;;  %p718_p5 = scmp.ne.s32.totalorder %s519_s6, %s717_s30  ;;  %p722_p7 = scmp.lt.s32.totalorder %s519_s6, %s519_s6 }
  0x54   :  { %351 = vmatpush1.msra.mxu0 %v325_v50  ;;  %598 = vmatpush3.msra.mxu1 %v79_v61  ;;  %v336_v46 = vrot.slane %v331_v44, %v129_v41  ;;  %p723_p8 = scmp.lt.s32.totalorder %s721_s8, %s717_s30 }
  0x55   :  { %352 = vmatprep.subr.mxu0 %v323_v51  ;;  %412 = vmatprep.mubr.f32.mxu0 %v748_v0  ;;  %v340_v51 = vrot.slane %v331_v44, %v133_v47 }
  0x56   :  { %353 = vmatpush1.msra.mxu0 %v322_v53  ;;  %602 = vmatprep.subr.mxu1 %v748_v0  ;;  %v134_v53 = vrot.slane %v125_v42, %v133_v47  ;;  %p724_p9 = por %p723_p8, %p722_p7 }
  0x57   :  { %354 = vmatprep.subr.mxu0 %v320_v54  ;;  %600 = vmatmul.mubr.f32.vlgmr.msra.gmra.mxu1 %v75_v45  ;;  %v130_v45 = vrot.slane %v125_v42, %v129_v41 }
  0x58   :  { %355 = vmatpush1.msra.mxu0 %v319_v56  ;;  %603 = vmatpush3.msra.mxu1 %v330_v3  ;;  %p725_p10 = pnand %p724_p9, %p718_p5 }
  0x59   :  { %356 = vmatprep.subr.mxu0 %v317_v57  ;;  %604 = vmatprep.subr.mxu1 %v748_v0 }
  0x5a   :  { %357 = vmatpush1.msra.mxu0 %v316_v59  ;;  %605 = vmatpush3.msra.mxu1 %v327_v6 }
  0x5b   :  { %358 = vmatprep.subr.mxu0 %v314_v60  ;;  %606 = vmatprep.subr.mxu1 %v748_v0 }
  0x5c   :  { %359 = vmatpush1.msra.mxu0 %v313_v62  ;;  %607 = vmatpush3.msra.mxu1 %v324_v9 }
  0x5d   :  { %360 = vmatprep.subr.mxu0 %v311_v63  ;;  %608 = vmatprep.subr.mxu1 %v748_v0 }
  0x5e   :  { %361 = vmatpush1.msra.mxu0 %v310_v1  ;;  %609 = vmatpush3.msra.mxu1 %v321_v12  ;;  %v137_v1 = vsub.s32 2, %v128_v40 }
  0x5f   :  { %362 = vmatprep.subr.mxu0 %v308_v2  ;;  %610 = vmatprep.subr.mxu1 %v748_v0 }
  0x60   :  { %363 = vmatpush1.msra.mxu0 %v307_v4  ;;  %611 = vmatpush3.msra.mxu1 %v318_v15  ;;  %v344_v2 = vrot.slane %v331_v44, %v137_v1  ;;  %v138_v4 = vrot.slane %v125_v42, %v137_v1 }
  0x61   :  { %364 = vmatprep.subr.mxu0 %v305_v5  ;;  %612 = vmatprep.subr.mxu1 %v748_v0 }
  0x62   :  { %365 = vmatpush1.msra.mxu0 %v304_v7  ;;  %613 = vmatpush3.msra.mxu1 %v315_v18 }
  0x63   :  { %366 = vmatprep.subr.mxu0 %v302_v8  ;;  %614 = vmatprep.subr.mxu1 %v748_v0 }
  0x64   :  { %367 = vmatpush1.msra.mxu0 %v301_v10  ;;  %615 = vmatpush3.msra.mxu1 %v312_v21 }
  0x65   :  { %368 = vmatprep.subr.mxu0 %v299_v11  ;;  %616 = vmatprep.subr.mxu1 %v748_v0 }
  0x66   :  { %369 = vmatpush1.msra.mxu0 %v298_v13  ;;  %617 = vmatpush3.msra.mxu1 %v309_v24 }
  0x67   :  { %370 = vmatprep.subr.mxu0 %v296_v14  ;;  %618 = vmatprep.subr.mxu1 %v748_v0 }
  0x68   :  { %371 = vmatpush1.msra.mxu0 %v295_v16  ;;  %619 = vmatpush3.msra.mxu1 %v306_v27 }
  0x69   :  { %372 = vmatprep.subr.mxu0 %v293_v17  ;;  %620 = vmatprep.subr.mxu1 %v748_v0 }
  0x6a   :  { %373 = vmatpush1.msra.mxu0 %v292_v19  ;;  %621 = vmatpush3.msra.mxu1 %v303_v30 }
  0x6b   :  { %374 = vmatprep.subr.mxu0 %v290_v20  ;;  %622 = vmatprep.subr.mxu1 %v748_v0 }
  0x6c   :  { %375 = vmatpush1.msra.mxu0 %v289_v22  ;;  %634 = vmatprep.mubr.msk.f32.mxu1 %vm749_vm0, %v748_v0 }
  0x6d   :  { %376 = vmatprep.subr.mxu0 %v287_v23  ;;  %623 = vmatpush3.msra.mxu1 %v300_v31 }
  0x6e   :  { %377 = vmatpush1.msra.mxu0 %v286_v25  ;;  %624 = vmatprep.subr.mxu1 %v748_v0 }
  0x6f   :  { %378 = vmatprep.subr.mxu0 %v284_v26  ;;  %625 = vmatpush3.msra.mxu1 %v297_v32 }
  0x70   :  { %379 = vmatpush1.msra.mxu0 %v283_v28  ;;  %626 = vmatprep.subr.mxu1 %v748_v0 }
  0x71   :  { %413 = vmatmul.mubr.f32.vlgmr.msra.gmra.mxu0 %v846_v29  ;;  %627 = vmatpush3.msra.mxu1 %v294_v33 }
  0x72   :  { %628 = vmatprep.subr.mxu1 %v748_v0 }
  0x73   :  { %629 = vmatpush3.msra.mxu1 %v291_v34 }
  0x74   :  { %630 = vmatprep.subr.mxu1 %v748_v0 }
  0x75   :  { %631 = vmatpush3.msra.mxu1 %v288_v35 }
  0x76   :  { %632 = vmatprep.subr.mxu1 %v748_v0 }
  0x77   :  { %633 = vmatpush3.msra.mxu1 %v285_v36 }
  0x78   :  { %635 = vmatmul.mubr.f32.vlgmr.msra.gmra.mxu1 %v846_v29 }
 0x111   :  { %v208_v43 = vpop.f32.mrf.mxu0 }
 0x112   :  { %v209_v49 = vadd.f32 %v208_v43, %v130_v45 }
 0x113   :  { %v210_v0 = vpop.f32.mrf.mxu0 }
 0x114   :  { %v211_v57 = vadd.f32 %v210_v0, %v134_v53 }
 0x117   :  { %v279_v37 = vpop.f32.mrf.mxu1 }
 0x118   :  { %v280_v8 = vadd.f32 %v279_v37, %v138_v4 }
 0x119   :  { %v601_v38 = vpop.f32.mrf.mxu1 }
 0x131   :  { %v414_v48 = vpop.f32.mrf.mxu0 }
 0x132   :  { %v415_v50 = vadd.f32 %v414_v48, %v336_v46 }
 0x133   :  { %v416_v52 = vpop.f32.mrf.mxu0 }
 0x134   :  { %v489_v54 = vadd.f32 %v415_v50, %v209_v49  ;;  %v417_v56 = vadd.f32 %v416_v52, %v340_v51 }
 0x136   :  { %v531_v55 = vmul.f32 -1.442695, %v489_v54  ;;  %v496_v58 = vadd.f32 %v417_v56, %v211_v57 }
 0x138   :  { %645 = vpow2.f32 %v531_v55  ;;  %v532_v59 = vmul.f32 -1.442695, %v496_v58  ;;  %v485_v60 = vpop.f32.mrf.mxu1 }
 0x139   :  { %v486_v6 = vadd.f32 %v485_v60, %v344_v2 }
 0x13a   :  { %v636_v61 = vpop.f32.mrf.mxu1  ;;  %647 = vpow2.f32 %v532_v59 }
 0x145   :  { %v646_v62 = vpop.eup %645 }
 0x146   :  { %v493_v63 = vadd.f32 1.0, %v646_v62 }
 0x147   :  { %v648_v3 = vpop.eup %647 }
 0x148   :  { %649 = vrcp.f32 %v493_v63  ;;  %v500_v5 = vadd.f32 1.0, %v648_v3 }
 0x14a   :  { %651 = vrcp.f32 %v500_v5 }
 0x155   :  { %v650_v7 = vpop.eup %649 }
 0x156   :  { %v503_v9 = vmul.f32 %v650_v7, %v486_v6 }
 0x157   :  { %v652_v11 = vpop.eup %651 }
 0x158   :  { %v504_v10 = vadd.f32 %v503_v9, %v280_v8  ;;  %v506_v12 = vsub.f32 1.0, %v652_v11  ;;  %v508_v15 = vmul.f32 %v652_v11, %v846_v29 }
 0x15a   :  { %653 = vtanh.f32 %v504_v10 }
 0x167   :  { %v654_v13 = vpop.eup %653 }
 0x168   :  { %v507_v14 = vmul.f32 %v654_v13, %v506_v12 }
 0x16a   :  { %v509_v16 = vadd.f32 %v508_v15, %v507_v14 }
 0x16c   :  { %510 = vst [vmem:[#allocation2] sm:$0x1] %v509_v16  ;;  %511 = vst [vmem:[#allocation11] sm:$0x1] %v509_v16 }
 0x16d   :  { %728 = shalt.err (!%p725_p10)
}
 0x16e   :  { %521 = dma.vmem_to_hbm [thread:$0]  %s519_s6, 16, %s877_s7, [#allocation7]  }
 0x16f   :  { %741 = dma.done.wait [#allocation7], 16  }
 0x170   :  { %742 = vsyncadd [#allocation7], 4294967280 }
 0x171   :  { %525 = vsyncpa [#allocation6], 1 }
 0x172   :  { %526 = vsyncpa [#allocation9], 1 }
 0x173   :  { %527 = vsyncpa [#allocation7], 1 }

</bundles_post_ra>
